<compile_context>
chip_gen: v6e
topology: v6e:2x2x1
jax: 0.10.0
libtpu: 0.0.40
codegen_flags: <defaults>
</compile_context>

<pallas_src>
import numpy as np
import jax
import jax.numpy as jnp
from jax import lax
from jax.experimental import pallas as pl
from jax.experimental.pallas import tpu as pltpu

# Hyper-parameters implied by the module's __init__ (kept small & static).
KERNEL_SIZES = (2, 3, 4)                 # opt.kernel_sizes = "2 3 4"
KERNEL_NUM = 16                          # opt.kernel_num
EMB_DIM = 32                             # opt.emb_dim
VOCAB_NUM = 50                           # opt.vocab_num
POLARITIES_DIM = 3                       # opt.polarities_dim
BATCH = 2
SEQ_LEN = 16

K_MAX = max(KERNEL_SIZES)                            # 4
NUM_CONV_OUT = len(KERNEL_SIZES) * KERNEL_NUM        # 48
V_PAD = 64                                           # vocab padded for one-hot matmul
NC_PAD = 64                                          # conv channels padded (48 -> 64)
NEG_INF = -1e30


def textcnn_kernel(idx_ref,     # VMEM (BT*L, 1)          int32  token ids
                   embed_ref,   # VMEM (V_PAD, E)         bf16   padded embedding
                   wc_ref,      # VMEM (K_MAX, E, NC_PAD) bf16   per-offset conv weights
                   bc_ref,      # VMEM (1, NC_PAD)        f32    conv bias (post-pool)
                   mask_ref,    # VMEM (L, NC_PAD)        f32    additive validity mask
                   dw_ref,      # VMEM (NC_PAD, P)        bf16   dense weight
                   db_ref,      # VMEM (1, P)             f32    dense bias
                   out_ref):    # VMEM (BT, P)            f32
    BTL = idx_ref.shape[0]
    L = mask_ref.shape[0]
    BT = BTL // L

    # ---- 1. embedding gather as ONE one-hot MXU matmul (no scalar loop) ----
    idx = idx_ref[...]                                              # (BTL, 1) int32
    v_iota = lax.broadcasted_iota(jnp.int32, (BTL, V_PAD), 1)
    onehot = (v_iota == idx).astype(jnp.float32).astype(jnp.bfloat16)
    emb = jnp.dot(onehot, embed_ref[...],
                  preferred_element_type=jnp.float32)               # (BTL, E) f32

    # ---- 2. fused convs: sum_k roll(emb, +k) @ W_k (no im2col relayouts) ---
    # conv[b*L+t, o] = sum_k sum_c emb[b, t+k, c] * W[k, c, o]
    # Rows that wrap past a sequence end only feed positions masked in step 3.
    conv = jnp.dot(emb.astype(jnp.bfloat16), wc_ref[0],
                   preferred_element_type=jnp.float32)               # (BTL, NC_PAD)
    for k in range(1, K_MAX):
        emb_k = pltpu.roll(emb, shift=(BTL - k) % BTL, axis=0)       # row r -> emb[r+k]
        conv = conv + jnp.dot(emb_k.astype(jnp.bfloat16), wc_ref[k],
                              preferred_element_type=jnp.float32)

    # ---- 3. masked max-pool over time; bias AFTER the pool (f32 path) ------
    conv = conv.reshape(BT, L, NC_PAD) + mask_ref[...]               # broadcast add
    pooled = jnp.max(conv, axis=1) + bc_ref[...]                     # (BT, NC_PAD)

    # ---- 4. dense (columns already in torch.cat order; padded rows are 0) --
    logits = jnp.dot(pooled.astype(jnp.bfloat16), dw_ref[...],
                     preferred_element_type=jnp.float32) + db_ref[...]
    out_ref[...] = logits.astype(out_ref.dtype)


def init_params(key, seq_len=SEQ_LEN):
    """Deterministic synthetic parameters (shapes match the nn.Module)."""
    n_conv = len(KERNEL_SIZES)
    keys = jax.random.split(key, 1 + 2 * n_conv + 2)
    params = {}

    # nn.Embedding(vocab_num, emb_dim)
    embed = jax.random.normal(keys[0], (VOCAB_NUM, EMB_DIM), jnp.float32) * 0.1
    params['embed'] = embed                                           # f32 master
    embed_pad = jnp.zeros((V_PAD, EMB_DIM), jnp.float32).at[:VOCAB_NUM].set(embed)
    params['embed_pad'] = embed_pad.astype(jnp.bfloat16)              # MXU operand

    # nn.Conv1d(emb_dim, kernel_num, K): torch weight (KN, E, K), bias (KN,)
    wc = jnp.zeros((K_MAX, EMB_DIM, NC_PAD), jnp.float32)
    bc = jnp.zeros((1, NC_PAD), jnp.float32)
    mask = np.zeros((seq_len, NC_PAD), np.float32)
    for i, K in enumerate(KERNEL_SIZES):
        w_torch = jax.random.normal(keys[1 + 2 * i],
                                    (KERNEL_NUM, EMB_DIM, K), jnp.float32) * 0.05
        b = jax.random.normal(keys[2 + 2 * i], (KERNEL_NUM,), jnp.float32) * 0.05
        params[f'conv{K}_w'] = w_torch                                # f32 master
        params[f'conv{K}_b'] = b
        cols = slice(i * KERNEL_NUM, (i + 1) * KERNEL_NUM)
        # wc[k, c, o] = torch_w[o, c, k]; offsets k >= K stay zero.
        wc = wc.at[:K, :, cols].set(jnp.transpose(w_torch, (2, 1, 0)))
        bc = bc.at[:, cols].set(b[None, :])
        # valid time steps for kernel size K are t in [0, L-K]; mask the tail
        mask[seq_len - K + 1:, cols] = NEG_INF
    params['conv_w_fused'] = wc.astype(jnp.bfloat16)                  # MXU operand
    params['conv_b_fused'] = bc                                       # f32 bias
    params['pool_mask'] = jnp.asarray(mask)                           # f32 additive mask

    # nn.Linear(kernel_size * kernel_num, polarities_dim): torch weight (P, F)
    dw_torch = jax.random.normal(keys[-2], (POLARITIES_DIM, NUM_CONV_OUT),
                                 jnp.float32) * 0.05
    db = jax.random.normal(keys[-1], (POLARITIES_DIM,), jnp.float32) * 0.05
    params['dense_w_f32'] = dw_torch.T                                # (48, P) reference
    dw = jnp.zeros((NC_PAD, POLARITIES_DIM), jnp.float32).at[:NUM_CONV_OUT].set(dw_torch.T)
    params['dense_w'] = dw.astype(jnp.bfloat16)                       # MXU operand
    params['dense_b'] = db.reshape(1, POLARITIES_DIM)
    return params


def textcnn_forward(sen_indices, params):
    B, L = sen_indices.shape
    P = POLARITIES_DIM
    BT = B if B < 8 else 8                       # batch tile (grid axis, "parallel")
    assert B % BT == 0, "batch must be a multiple of the batch tile"
    idx = sen_indices.reshape(B * L, 1).astype(jnp.int32)

    return pl.pallas_call(
        textcnn_kernel,
        out_shape=jax.ShapeDtypeStruct((B, P), jnp.float32),
        grid=(B // BT,),
        in_specs=[
            pl.BlockSpec((BT * L, 1), lambda i: (i, 0)),              # token ids
            pl.BlockSpec((V_PAD, EMB_DIM), lambda i: (0, 0)),         # embedding
            pl.BlockSpec((K_MAX, EMB_DIM, NC_PAD), lambda i: (0, 0, 0)),
            pl.BlockSpec((1, NC_PAD), lambda i: (0, 0)),
            pl.BlockSpec((L, NC_PAD), lambda i: (0, 0)),
            pl.BlockSpec((NC_PAD, P), lambda i: (0, 0)),
            pl.BlockSpec((1, P), lambda i: (0, 0)),
        ],
        out_specs=pl.BlockSpec((BT, P), lambda i: (i, 0)),
        compiler_params=pltpu.CompilerParams(
            dimension_semantics=("parallel",)),
    )(idx,
      params['embed_pad'],
      params['conv_w_fused'], params['conv_b_fused'],
      params['pool_mask'],
      params['dense_w'], params['dense_b'])


def textcnn_reference(sen_indices, params):
    """Pure-JAX f32 reference mirroring the PyTorch forward (eval mode)."""
    emb = jnp.take(params['embed'], sen_indices, axis=0)              # (B, L, E)
    B, L, _ = emb.shape
    pooled = []
    for K in KERNEL_SIZES:
        w = params[f'conv{K}_w']                                      # (KN, E, K)
        b = params[f'conv{K}_b']
        L_out = L - K + 1
        conv = jnp.zeros((B, L_out, KERNEL_NUM), jnp.float32)
        for k in range(K):
            conv = conv + jnp.einsum('blc,oc->blo', emb[:, k:k + L_out, :], w[:, :, k])
        conv = conv + b[None, None, :]
        pooled.append(jnp.max(conv, axis=1))
    feat = jnp.concatenate(pooled, axis=-1)
    return feat @ params['dense_w_f32'] + params['dense_b']


if __name__ == "__main__":
    key = jax.random.PRNGKey(0)
    k_idx, k_params = jax.random.split(key)
    sen_indices = jax.random.randint(k_idx, (BATCH, SEQ_LEN), 0, VOCAB_NUM,
                                     dtype=jnp.int32)
    params = init_params(k_params, seq_len=SEQ_LEN)

    logits = textcnn_forward(sen_indices, params)
    jax.block_until_ready(logits)

    ref = textcnn_reference(sen_indices, params)
    assert logits.shape == (BATCH, POLARITIES_DIM)
    # kernel uses bf16 MXU operands (f32 accumulation); reference is pure f32
    assert jnp.allclose(logits, ref, atol=2e-2, rtol=2e-2), \
        f"mismatch:\n{logits}\nvs\n{ref}"
    print("KERNEL_OK")
</pallas_src>

<mosaic_0001>
module attributes {stable_mosaic.version = 11 : i64} {
  func.func @textcnn_kernel(%arg0: i32, %arg1: memref<32x1xi32, #tpu.memory_space<vmem>>, %arg2: memref<64x32xbf16, #tpu.memory_space<vmem>>, %arg3: memref<4x32x64xbf16, #tpu.memory_space<vmem>>, %arg4: memref<1x64xf32, #tpu.memory_space<vmem>>, %arg5: memref<16x64xf32, #tpu.memory_space<vmem>>, %arg6: memref<64x3xbf16, #tpu.memory_space<vmem>>, %arg7: memref<1x3xf32, #tpu.memory_space<vmem>>, %arg8: memref<2x3xf32, #tpu.memory_space<vmem>>) attributes {dimension_semantics = [#tpu.dimension_semantics<parallel>], iteration_bounds = array<i64: 1>, scalar_prefetch = 0 : i64, scratch_operands = 0 : i64, tpu.core_type = #tpu.core_type<tc>, window_params = [{transform_indices = @transform_0, window_bounds = array<i64: 32, 1>}, {pipeline_mode = #tpu.pipeline_mode<synchronous>, transform_indices = @transform_1, window_bounds = array<i64: 64, 32>}, {pipeline_mode = #tpu.pipeline_mode<synchronous>, transform_indices = @transform_2, window_bounds = array<i64: 4, 32, 64>}, {pipeline_mode = #tpu.pipeline_mode<synchronous>, transform_indices = @transform_3, window_bounds = array<i64: 1, 64>}, {pipeline_mode = #tpu.pipeline_mode<synchronous>, transform_indices = @transform_4, window_bounds = array<i64: 16, 64>}, {pipeline_mode = #tpu.pipeline_mode<synchronous>, transform_indices = @transform_5, window_bounds = array<i64: 64, 3>}, {pipeline_mode = #tpu.pipeline_mode<synchronous>, transform_indices = @transform_6, window_bounds = array<i64: 1, 3>}, {transform_indices = @transform_7, window_bounds = array<i64: 2, 3>}]} {
    %c0 = arith.constant 0 : index
    %c0_0 = arith.constant 0 : index
    %0 = vector.load %arg1[%c0, %c0_0] : memref<32x1xi32, #tpu.memory_space<vmem>>, vector<32x1xi32>
    %1 = tpu.iota {dimensions = array<i32: 1>} : vector<32x64xi32>
    %2 = vector.broadcast %0 : vector<32x1xi32> to vector<32x64xi32>
    %3 = arith.cmpi eq, %1, %2 : vector<32x64xi32>
    %4 = arith.extui %3 : vector<32x64xi1> to vector<32x64xi32>
    %5 = arith.sitofp %4 : vector<32x64xi32> to vector<32x64xf32>
    %6 = arith.truncf %5 : vector<32x64xf32> to vector<32x64xbf16>
    %c0_1 = arith.constant 0 : index
    %c0_2 = arith.constant 0 : index
    %7 = vector.load %arg2[%c0_1, %c0_2] : memref<64x32xbf16, #tpu.memory_space<vmem>>, vector<64x32xbf16>
    %cst = arith.constant dense<0.000000e+00> : vector<32x32xf32>
    %8 = tpu.matmul %6, %7, %cst {dimension_numbers = #tpu.dot_dimension_numbers<[1], [0], [0], [1], [0, 0, 1, 1], [], []>} : vector<32x64xbf16>, vector<64x32xbf16>, vector<32x32xf32> -> vector<32x32xf32>
    %9 = arith.truncf %8 : vector<32x32xf32> to vector<32x32xbf16>
    %c0_3 = arith.constant 0 : index
    %c0_4 = arith.constant 0 : index
    %c0_5 = arith.constant 0 : index
    %10 = vector.load %arg3[%c0_3, %c0_4, %c0_5] : memref<4x32x64xbf16, #tpu.memory_space<vmem>>, vector<1x32x64xbf16>
    %11 = vector.shape_cast %10 : vector<1x32x64xbf16> to vector<32x64xbf16>
    %cst_6 = arith.constant dense<0.000000e+00> : vector<32x64xf32>
    %12 = tpu.matmul %9, %11, %cst_6 {dimension_numbers = #tpu.dot_dimension_numbers<[1], [0], [0], [1], [0, 0, 1, 1], [], []>} : vector<32x32xbf16>, vector<32x64xbf16>, vector<32x64xf32> -> vector<32x64xf32>
    %c31_i32 = arith.constant 31 : i32
    %13 = tpu.dynamic_rotate %8 by %c31_i32 dim 0 : vector<32x32xf32>, i32 -> vector<32x32xf32>
    %14 = arith.truncf %13 : vector<32x32xf32> to vector<32x32xbf16>
    %c1 = arith.constant 1 : index
    %c0_7 = arith.constant 0 : index
    %c0_8 = arith.constant 0 : index
    %15 = vector.load %arg3[%c1, %c0_7, %c0_8] : memref<4x32x64xbf16, #tpu.memory_space<vmem>>, vector<1x32x64xbf16>
    %16 = vector.shape_cast %15 : vector<1x32x64xbf16> to vector<32x64xbf16>
    %cst_9 = arith.constant dense<0.000000e+00> : vector<32x64xf32>
    %17 = tpu.matmul %14, %16, %cst_9 {dimension_numbers = #tpu.dot_dimension_numbers<[1], [0], [0], [1], [0, 0, 1, 1], [], []>} : vector<32x32xbf16>, vector<32x64xbf16>, vector<32x64xf32> -> vector<32x64xf32>
    %18 = arith.addf %12, %17 : vector<32x64xf32>
    %c30_i32 = arith.constant 30 : i32
    %19 = tpu.dynamic_rotate %8 by %c30_i32 dim 0 : vector<32x32xf32>, i32 -> vector<32x32xf32>
    %20 = arith.truncf %19 : vector<32x32xf32> to vector<32x32xbf16>
    %c2 = arith.constant 2 : index
    %c0_10 = arith.constant 0 : index
    %c0_11 = arith.constant 0 : index
    %21 = vector.load %arg3[%c2, %c0_10, %c0_11] : memref<4x32x64xbf16, #tpu.memory_space<vmem>>, vector<1x32x64xbf16>
    %22 = vector.shape_cast %21 : vector<1x32x64xbf16> to vector<32x64xbf16>
    %cst_12 = arith.constant dense<0.000000e+00> : vector<32x64xf32>
    %23 = tpu.matmul %20, %22, %cst_12 {dimension_numbers = #tpu.dot_dimension_numbers<[1], [0], [0], [1], [0, 0, 1, 1], [], []>} : vector<32x32xbf16>, vector<32x64xbf16>, vector<32x64xf32> -> vector<32x64xf32>
    %24 = arith.addf %18, %23 : vector<32x64xf32>
    %c29_i32 = arith.constant 29 : i32
    %25 = tpu.dynamic_rotate %8 by %c29_i32 dim 0 : vector<32x32xf32>, i32 -> vector<32x32xf32>
    %26 = arith.truncf %25 : vector<32x32xf32> to vector<32x32xbf16>
    %c3 = arith.constant 3 : index
    %c0_13 = arith.constant 0 : index
    %c0_14 = arith.constant 0 : index
    %27 = vector.load %arg3[%c3, %c0_13, %c0_14] : memref<4x32x64xbf16, #tpu.memory_space<vmem>>, vector<1x32x64xbf16>
    %28 = vector.shape_cast %27 : vector<1x32x64xbf16> to vector<32x64xbf16>
    %cst_15 = arith.constant dense<0.000000e+00> : vector<32x64xf32>
    %29 = tpu.matmul %26, %28, %cst_15 {dimension_numbers = #tpu.dot_dimension_numbers<[1], [0], [0], [1], [0, 0, 1, 1], [], []>} : vector<32x32xbf16>, vector<32x64xbf16>, vector<32x64xf32> -> vector<32x64xf32>
    %30 = arith.addf %24, %29 : vector<32x64xf32>
    %31 = vector.shape_cast %30 : vector<32x64xf32> to vector<2x16x64xf32>
    %c0_16 = arith.constant 0 : index
    %c0_17 = arith.constant 0 : index
    %32 = vector.load %arg5[%c0_16, %c0_17] : memref<16x64xf32, #tpu.memory_space<vmem>>, vector<16x64xf32>
    %33 = vector.shape_cast %32 : vector<16x64xf32> to vector<1x16x64xf32>
    %34 = vector.broadcast %33 : vector<1x16x64xf32> to vector<2x16x64xf32>
    %35 = arith.addf %31, %34 : vector<2x16x64xf32>
    %cst_18 = arith.constant dense<0xFF800000> : vector<2x64xf32>
    %36 = vector.multi_reduction <maximumf>, %35, %cst_18 [1] : vector<2x16x64xf32> to vector<2x64xf32>
    %c0_19 = arith.constant 0 : index
    %c0_20 = arith.constant 0 : index
    %37 = vector.load %arg4[%c0_19, %c0_20] : memref<1x64xf32, #tpu.memory_space<vmem>>, vector<1x64xf32>
    %38 = vector.broadcast %37 : vector<1x64xf32> to vector<2x64xf32>
    %39 = arith.addf %36, %38 : vector<2x64xf32>
    %40 = arith.truncf %39 : vector<2x64xf32> to vector<2x64xbf16>
    %c0_21 = arith.constant 0 : index
    %c0_22 = arith.constant 0 : index
    %41 = vector.load %arg6[%c0_21, %c0_22] : memref<64x3xbf16, #tpu.memory_space<vmem>>, vector<64x3xbf16>
    %cst_23 = arith.constant dense<0.000000e+00> : vector<2x3xf32>
    %42 = tpu.matmul %40, %41, %cst_23 {dimension_numbers = #tpu.dot_dimension_numbers<[1], [0], [0], [1], [0, 0, 1, 1], [], []>} : vector<2x64xbf16>, vector<64x3xbf16>, vector<2x3xf32> -> vector<2x3xf32>
    %c0_24 = arith.constant 0 : index
    %c0_25 = arith.constant 0 : index
    %43 = vector.load %arg7[%c0_24, %c0_25] : memref<1x3xf32, #tpu.memory_space<vmem>>, vector<1x3xf32>
    %44 = vector.broadcast %43 : vector<1x3xf32> to vector<2x3xf32>
    %45 = arith.addf %42, %44 : vector<2x3xf32>
    %c0_26 = arith.constant 0 : index
    %c0_27 = arith.constant 0 : index
    %46 = vector.load %arg8[%c0_26, %c0_27] : memref<2x3xf32, #tpu.memory_space<vmem>>, vector<2x3xf32>
    tpu.vector_store %arg8[%c0_26, %c0_27], %45 {strides = array<i32>} : memref<2x3xf32, #tpu.memory_space<vmem>>, vector<2x3xf32>,
    return
  }
  func.func @transform_0(%arg0: i32) -> (i32, i32) {
    %c0_i32 = arith.constant 0 : i32
    %c0_i32_0 = arith.constant 0 : i32
    return %arg0, %c0_i32 : i32, i32
  }
  func.func @transform_1(%arg0: i32) -> (i32, i32) {
    %c0_i32 = arith.constant 0 : i32
    %c0_i32_0 = arith.constant 0 : i32
    %c0_i32_1 = arith.constant 0 : i32
    return %c0_i32, %c0_i32_0 : i32, i32
  }
  func.func @transform_2(%arg0: i32) -> (i32, i32, i32) {
    %c0_i32 = arith.constant 0 : i32
    %c0_i32_0 = arith.constant 0 : i32
    %c0_i32_1 = arith.constant 0 : i32
    %c0_i32_2 = arith.constant 0 : i32
    return %c0_i32, %c0_i32_0, %c0_i32_1 : i32, i32, i32
  }
  func.func @transform_3(%arg0: i32) -> (i32, i32) {
    %c0_i32 = arith.constant 0 : i32
    %c0_i32_0 = arith.constant 0 : i32
    %c0_i32_1 = arith.constant 0 : i32
    return %c0_i32, %c0_i32_0 : i32, i32
  }
  func.func @transform_4(%arg0: i32) -> (i32, i32) {
    %c0_i32 = arith.constant 0 : i32
    %c0_i32_0 = arith.constant 0 : i32
    %c0_i32_1 = arith.constant 0 : i32
    return %c0_i32, %c0_i32_0 : i32, i32
  }
  func.func @transform_5(%arg0: i32) -> (i32, i32) {
    %c0_i32 = arith.constant 0 : i32
    %c0_i32_0 = arith.constant 0 : i32
    %c0_i32_1 = arith.constant 0 : i32
    return %c0_i32, %c0_i32_0 : i32, i32
  }
  func.func @transform_6(%arg0: i32) -> (i32, i32) {
    %c0_i32 = arith.constant 0 : i32
    %c0_i32_0 = arith.constant 0 : i32
    %c0_i32_1 = arith.constant 0 : i32
    return %c0_i32, %c0_i32_0 : i32, i32
  }
  func.func @transform_7(%arg0: i32) -> (i32, i32) {
    %c0_i32 = arith.constant 0 : i32
    %c0_i32_0 = arith.constant 0 : i32
    return %arg0, %c0_i32 : i32, i32
  }
}

</mosaic_0001>

<bundles_post_ra>
// kernel: tpu_custom_call.1
= control target key start
LH: loop header
LB: loop body
LE: loop exit
PB: predicated region body
PF: predicated region fallthrough
CT: control target
= control target key end

     0   :  { %v794_v2 = vmov 0   ;;  %s941_s0 = inlined_call_operand.vmem [shape: s32[32,1], index: 0, kind: input, shape index: {}]   ;;  %s942_s1 = inlined_call_operand.vmem [shape: bf16[64,32], index: 1, kind: input, shape index: {}]   ;;  %s943_s2 = inlined_call_operand.vmem [shape: bf16[4,32,64], index: 2, kind: input, shape index: {}]   ;;  %s944_s3 = inlined_call_operand.vmem [shape: f32[1,64], index: 3, kind: input, shape index: {}]   ;;  %s945_s4 = inlined_call_operand.vmem [shape: f32[16,64], index: 4, kind: input, shape index: {}]   ;;  %s946_s5 = inlined_call_operand.vmem [shape: bf16[64,3], index: 5, kind: input, shape index: {}]   ;;  %s947_s6 = inlined_call_operand.vmem [shape: f32[1,3], index: 6, kind: input, shape index: {}]   ;;  %s948_s7 = inlined_call_operand.hbm [shape: f32[2,3], index: 7, kind: output, shape index: {}]  }
   0x1   :  { %v30_v0 = vld [vmem:[%s941_s0 + $0x10] sm:$0xff]  ;;  %v28_v1 = vld [vmem:[%s941_s0] sm:$0xff]  ;;  %755 = vset.pattern.permute.xlu1 %v794_v2  ;;  %754 = vset.pattern.permute.xlu0 %v794_v2  ;;  %v31_v3 = vld [vmem:[%s941_s0 + $0x18] sm:$0xff] }
   0x2   :  { %v29_v4 = vld [vmem:[%s941_s0 + $0x8] sm:$0xff]  ;;  %41 = vperm.xlu1 %755, %v30_v0   ;;  %35 = vperm.xlu0 %754, %v28_v1   ;;  %v756_v5 = vld [vmem:[%s942_s1 + $0x18] sm:$0xff]   ;;  %v757_v6 = vld [vmem:[%s942_s1 + $0x10] sm:$0xff]  }
   0x3   :  { %694 = vmatprep.subr.bf16.mxu0 %v756_v5  ;;  %v758_v7 = vld [vmem:[%s942_s1 + $0x8] sm:$0xff]   ;;  %v759_v8 = vld [vmem:[%s942_s1] sm:$0xff]  }
   0x4   :  { %695 = vmatpush3.bf16.msra.mxu0 %v756_v5 }
   0x5   :  { %696 = vmatprep.subr.bf16.mxu0 %v757_v6 }
   0x6   :  { %44 = vperm.xlu1 %755, %v31_v3   ;;  %38 = vperm.xlu0 %754, %v29_v4  }
   0x8   :  { %697 = vmatpush3.bf16.msra.mxu0 %v757_v6 }
   0x9   :  { %698 = vmatprep.subr.bf16.mxu0 %v758_v7 }
   0xc   :  { %699 = vmatpush3.bf16.msra.mxu0 %v758_v7 }
   0xd   :  { %12 = vsyncpa [#allocation3], 0  ;;  %700 = vmatprep.subr.bf16.mxu0 %v759_v8  ;;  %v795_v9 = vmov 0.0   ;;  %v32_v10 = vlaneseq  ;;  %vm92_vm4 = vcmask 523264   ;;  %v760_v22 = vld [vmem:[%s943_s2 + $0x18] sm:$0xff]   ;;  %v761_v23 = vld [vmem:[%s943_s2 + $0x10] sm:$0xff]  }
   0xe   :  { %706 = vmatprep.subr.bf16.mxu1 %v760_v22  ;;  %v762_v24 = vld [vmem:[%s943_s2 + $0x8] sm:$0xff]   ;;  %vm184_vm6 = vcmask 261120   ;;  %v763_v40 = vld [vmem:[%s943_s2] sm:$0xff]   ;;  %v766_v55 = vld [vmem:[%s943_s2 + $0x38] sm:$0xff]   ;;  %vm796_vm9 = vmmov 0   ;;  %vm536_vm10 = vcmask 1041409  }
   0xf   :  { %v33_v11 = vand.u32 127, %v32_v10  ;;  %707 = vmatpush3.bf16.msra.mxu1 %v760_v22  ;;  %v159_v26 = vshrl.u32 %v32_v10, 7  ;;  %v764_v45 = vld [vmem:[%s943_s2 + $0x28] sm:$0xff]   ;;  %v765_v49 = vld [vmem:[%s943_s2 + $0x20] sm:$0xff]   ;;  %v767_v61 = vld [vmem:[%s943_s2 + $0x30] sm:$0xff]   ;;  %vm606_vm11 = vcmask 17408  }
  0x10   :  { %701 = vmatpush3.bf16.msra.mxu0 %v759_v8  ;;  %708 = vmatprep.subr.bf16.mxu1 %v761_v23  ;;  %v768_v3 = vld [vmem:[%s946_s5 + $0x18] sm:$0xff]   ;;  %v769_v4 = vld [vmem:[%s946_s5 + $0x10] sm:$0xff]   ;;  %v770_v5 = vld [vmem:[%s946_s5 + $0x8] sm:$0xff]  }
  0x11   :  { %738 = vmatprep.subr.bf16.mxu0 %v795_v9  ;;  %vm160_vm5 = vcmp.lt.s32.totalorder %v159_v26, 7  ;;  %vm311_vm7 = vcmp.lt.s32.totalorder %v159_v26, 6  ;;  %vm398_vm8 = vcmp.lt.s32.totalorder %v159_v26, 5  ;;  %v771_v6 = vld [vmem:[%s946_s5] sm:$0xff]  }
  0x12   :  { %v481_v26 = vld [vmem:[%s945_s4] sm:$0xff] }
  0x13   :  { %709 = vmatpush3.bf16.msra.mxu1 %v761_v23 }
  0x14   :  { %714 = vmatprep.subr.bf16.mxu1 %v762_v24 }
  0x7d   :  { %v42_v12 = vpop.permute.xlu1 %41  ;;  %v36_v13 = vpop.permute.xlu0 %35 }
  0x7e   :  { %vm48_vm0 = vcmp.eq.s32.totalorder %v33_v11, %v42_v12  ;;  %vm46_vm1 = vcmp.eq.s32.totalorder %v33_v11, %v36_v13 }
  0x7f   :  { %v624_v16 = vsel %vm48_vm0, 1.0, %v795_v9  ;;  %v622_v17 = vsel %vm46_vm1, 1.0, %v795_v9 }
  0x81   :  { %v45_v14 = vpop.permute.xlu1 %44  ;;  %v39_v15 = vpop.permute.xlu0 %38 }
  0x82   :  { %vm49_vm2 = vcmp.eq.s32.totalorder %v33_v11, %v45_v14  ;;  %vm47_vm3 = vcmp.eq.s32.totalorder %v33_v11, %v39_v15 }
  0x83   :  { %v625_v18 = vsel %vm49_vm2, 1.0, %v795_v9  ;;  %v623_v19 = vsel %vm47_vm3, 1.0, %v795_v9 }
  0x84   :  { %v59_v20 = vpack.c.bf16 %v625_v18, %v624_v16  ;;  %v58_v21 = vpack.c.bf16 %v623_v19, %v622_v17 }
  0x86   :  { %702 = vmatprep.mubr.msk.bf16.mxu0 %vm92_vm4, %v58_v21 }
  0x87   :  { %703 = vmatmul.mubr.msk.bf16.vlgmr.msra.gmra.mxu0 %vm92_vm4, %v59_v20 }
  0x88   :  { %739 = vmatpush3.bf16.msra.mxu0 %v768_v3  ;;  %746 = vmatprep.mubr.msk.bf16.mxu0 %vm796_vm9, %v795_v9 }
  0x89   :  { %740 = vmatprep.subr.bf16.mxu0 %v795_v9 }
  0x8c   :  { %741 = vmatpush3.bf16.msra.mxu0 %v769_v4 }
  0x8d   :  { %742 = vmatprep.subr.bf16.mxu0 %v795_v9 }
  0x90   :  { %743 = vmatpush3.bf16.msra.mxu0 %v770_v5  ;;  %v661_v5 = vld [vmem:[%s947_s6] ss:$0 sm:$0xff] }
  0x91   :  { %744 = vmatprep.subr.bf16.mxu0 %v795_v9 }
  0x94   :  { %745 = vmatpush3.bf16.msra.mxu0 %v771_v6 }
 0x147   :  { %v704_v25 = vpop.f32.mrf.mxu0 }
 0x148   :  { %v156_v31 = vrot.slane %v704_v25, 1  ;;  %v309_v43 = vrot.slane %v704_v25, 2  ;;  %v396_v53 = vrot.slane %v704_v25, 3 }
 0x149   :  { %v133_v27 = vpop.f32.mrf.mxu0 }
 0x14a   :  { %v154_v32 = vrot.slane %v133_v27, 1  ;;  %v307_v44 = vrot.slane %v133_v27, 2  ;;  %v394_v54 = vrot.slane %v133_v27, 3 }
 0x14b   :  { %v705_v28 = vpop.f32.mrf.mxu0 }
 0x14c   :  { %v157_v29 = vrot.slane %v705_v28, 1  ;;  %v149_v48 = vpack.c.bf16 %v705_v28, %v704_v25  ;;  %v310_v50 = vrot.slane %v705_v28, 2  ;;  %v397_v62 = vrot.slane %v705_v28, 3 }
 0x14d   :  { %v136_v30 = vpop.f32.mrf.mxu0 }
 0x14e   :  { %v155_v33 = vrot.slane %v136_v30, 1  ;;  %v161_v34 = vsel %vm160_vm5, %v156_v31, %v157_v29  ;;  %v164_v35 = vsel %vm160_vm5, %v157_v29, %v154_v32  ;;  %v148_v41 = vpack.c.bf16 %v136_v30, %v133_v27 }
 0x14f   :  { %v166_v39 = vpack.c.bf16 %v164_v35, %v161_v34  ;;  %v308_v42 = vrot.slane %v136_v30, 2  ;;  %v395_v52 = vrot.slane %v136_v30, 3  ;;  %v312_v56 = vsel %vm311_vm7, %v309_v43, %v310_v50 }
 0x150   :  { %v162_v36 = vsel %vm160_vm5, %v155_v33, %v156_v31  ;;  %v163_v37 = vsel %vm160_vm5, %v154_v32, %v155_v33  ;;  %v315_v57 = vsel %vm311_vm7, %v310_v50, %v307_v44  ;;  %v399_v0 = vsel %vm398_vm8, %v396_v53, %v397_v62  ;;  %v482_v32 = vld [vmem:[%s945_s4 + $0x8] sm:$0xff] }
 0x151   :  { %v165_v38 = vpack.c.bf16 %v162_v36, %v163_v37  ;;  %v313_v46 = vsel %vm311_vm7, %v308_v42, %v309_v43  ;;  %v314_v47 = vsel %vm311_vm7, %v307_v44, %v308_v42  ;;  %v400_v58 = vsel %vm398_vm8, %v395_v52, %v396_v53 }
 0x152   :  { %v316_v51 = vpack.c.bf16 %v313_v46, %v314_v47  ;;  %v401_v59 = vsel %vm398_vm8, %v394_v54, %v395_v52  ;;  %v317_v60 = vpack.c.bf16 %v315_v57, %v312_v56  ;;  %v402_v1 = vsel %vm398_vm8, %v397_v62, %v394_v54  ;;  %v660_v56 = vld [vmem:[%s944_s3] ss:$0 sm:$0xff]  ;;  %s797_s3 = smov [#allocation2]  }
 0x153   :  { %710 = vmatprep.mubr.msk.bf16.mxu1 %vm184_vm6, %v165_v38  ;;  %v403_v63 = vpack.c.bf16 %v400_v58, %v401_v59  ;;  %v404_v2 = vpack.c.bf16 %v402_v1, %v399_v0  ;;  %s614_s19 = sshll.u32 %s797_s3, 4  ;;  %s615_s19 = int_to_ptr.vmem [resolvable:$true] %s614_s19 }
 0x154   :  { %711 = vmatmul.mubr.msk.bf16.vlgmr.msra.gmra.mxu1 %vm184_vm6, %v166_v39  ;;  %s772_s20 = scalar_lea.vmem %s615_s19, 32  ;;  %p777_p1 = scmp.lt.s32.totalorder %s615_s19, %s615_s19 }
 0x155   :  { %715 = vmatpush3.bf16.msra.mxu1 %v762_v24  ;;  %718 = vmatprep.mubr.msk.bf16.mxu1 %vm184_vm6, %v148_v41  ;;  %p773_p0 = scmp.ne.s32.totalorder %s615_s19, %s772_s20  ;;  %p778_p2 = scmp.lt.s32.totalorder %s772_s20, %s772_s20 }
 0x156   :  { %716 = vmatprep.subr.bf16.mxu1 %v763_v40 }
 0x157   :  { %p779_p3 = por %p778_p2, %p777_p1 }
 0x159   :  { %717 = vmatpush3.bf16.msra.mxu1 %v763_v40  ;;  %p780_p4 = pnand %p779_p3, %p773_p0 }
 0x15a   :  { %722 = vmatprep.subr.bf16.mxu1 %v764_v45 }
 0x15c   :  { %719 = vmatmul.mubr.msk.bf16.vlgmr.msra.gmra.mxu1 %vm184_vm6, %v149_v48 }
 0x15d   :  { %723 = vmatpush3.bf16.msra.mxu1 %v764_v45  ;;  %726 = vmatprep.mubr.msk.bf16.mxu1 %vm184_vm6, %v316_v51 }
 0x15e   :  { %724 = vmatprep.subr.bf16.mxu1 %v765_v49 }
 0x161   :  { %725 = vmatpush3.bf16.msra.mxu1 %v765_v49 }
 0x162   :  { %730 = vmatprep.subr.bf16.mxu1 %v766_v55 }
 0x164   :  { %727 = vmatmul.mubr.msk.bf16.vlgmr.msra.gmra.mxu1 %vm184_vm6, %v317_v60 }
 0x165   :  { %731 = vmatpush3.bf16.msra.mxu1 %v766_v55  ;;  %734 = vmatprep.mubr.msk.bf16.mxu1 %vm184_vm6, %v403_v63 }
 0x166   :  { %732 = vmatprep.subr.bf16.mxu1 %v767_v61 }
 0x169   :  { %733 = vmatpush3.bf16.msra.mxu1 %v767_v61 }
 0x16c   :  { %735 = vmatmul.mubr.msk.bf16.vlgmr.msra.gmra.mxu1 %vm184_vm6, %v404_v2 }
 0x214   :  { %v712_v7 = vpop.f32.mrf.mxu1 }
 0x216   :  { %v225_v8 = vpop.f32.mrf.mxu1 }
 0x218   :  { %v713_v10 = vpop.f32.mrf.mxu1 }
 0x21a   :  { %v228_v11 = vpop.f32.mrf.mxu1 }
 0x21c   :  { %v720_v12 = vpop.f32.mrf.mxu1 }
 0x21d   :  { %v301_v19 = vadd.f32 %v720_v12, %v712_v7 }
 0x21e   :  { %v292_v13 = vpop.f32.mrf.mxu1 }
 0x21f   :  { %v293_v21 = vadd.f32 %v292_v13, %v225_v8 }
 0x220   :  { %v721_v14 = vpop.f32.mrf.mxu1 }
 0x221   :  { %v304_v24 = vadd.f32 %v721_v14, %v713_v10 }
 0x222   :  { %v295_v15 = vpop.f32.mrf.mxu1 }
 0x223   :  { %v296_v28 = vadd.f32 %v295_v15, %v228_v11 }
 0x224   :  { %v728_v16 = vpop.f32.mrf.mxu1 }
 0x225   :  { %v392_v22 = vadd.f32 %v728_v16, %v301_v19 }
 0x226   :  { %v375_v17 = vpop.f32.mrf.mxu1 }
 0x227   :  { %v390_v25 = vadd.f32 %v375_v17, %v293_v21 }
 0x228   :  { %v729_v18 = vpop.f32.mrf.mxu1 }
 0x229   :  { %v393_v29 = vadd.f32 %v729_v18, %v304_v24 }
 0x22a   :  { %v378_v20 = vpop.f32.mrf.mxu1 }
 0x22b   :  { %v391_v33 = vadd.f32 %v378_v20, %v296_v28 }
 0x22c   :  { %v736_v23 = vpop.f32.mrf.mxu1 }
 0x22d   :  { %v479_v9 = vadd.f32 %v736_v23, %v392_v22 }
 0x22e   :  { %v462_v27 = vpop.f32.mrf.mxu1 }
 0x22f   :  { %v477_v30 = vadd.f32 %v462_v27, %v390_v25  ;;  %v485_v34 = vadd.f32 %v481_v26, %v479_v9 }
 0x230   :  { %v737_v31 = vpop.f32.mrf.mxu1 }
 0x231   :  { %v480_v35 = vadd.f32 %v737_v31, %v393_v29  ;;  %v483_v37 = vadd.f32 %v481_v26, %v477_v30  ;;  %v496_v40 = vsel %vm92_vm4, %v485_v34, -inf }
 0x232   :  { %v465_v36 = vpop.f32.mrf.mxu1 }
 0x233   :  { %v486_v38 = vadd.f32 %v482_v32, %v480_v35  ;;  %v478_v39 = vadd.f32 %v465_v36, %v391_v33  ;;  %v487_v44 = vsel %vm92_vm4, %v483_v37, -inf }
 0x235   :  { %v497_v41 = vsel %vm92_vm4, %v486_v38, -inf  ;;  %v484_v42 = vadd.f32 %v482_v32, %v478_v39 }
 0x236   :  { %v498_v43 = vmax.f32 %v496_v40, %v497_v41 }
 0x237   :  { %v488_v45 = vsel %vm92_vm4, %v484_v42, -inf }
 0x238   :  { %v499_v46 = vrot.slane %v498_v43, 4  ;;  %v489_v47 = vmax.f32 %v487_v44, %v488_v45 }
 0x23a   :  { %v500_v48 = vmax.f32 %v498_v43, %v499_v46  ;;  %v490_v49 = vrot.slane %v489_v47, 4 }
 0x23c   :  { %v501_v50 = vrot.slane %v500_v48, 2  ;;  %v491_v51 = vmax.f32 %v489_v47, %v490_v49 }
 0x23e   :  { %v502_v52 = vmax.f32 %v500_v48, %v501_v50  ;;  %v492_v53 = vrot.slane %v491_v51, 2 }
 0x240   :  { %v503_v54 = vrot.slane %v502_v52, 1  ;;  %v493_v55 = vmax.f32 %v491_v51, %v492_v53 }
 0x242   :  { %v504_v57 = vmax.f32 %v502_v52, %v503_v54  ;;  %v494_v58 = vrot.slane %v493_v55, 1 }
 0x244   :  { %v513_v59 = vadd.f32 %v660_v56, %v504_v57  ;;  %v495_v60 = vmax.f32 %v493_v55, %v494_v58 }
 0x246   :  { %v515_v61 = vpack.c.bf16 %v513_v59, %v513_v59  ;;  %v512_v62 = vadd.f32 %v660_v56, %v495_v60 }
 0x248   :  { %v534_v63 = vunpack.c.l.b16 %v515_v61  ;;  %v514_v0 = vpack.c.bf16 %v512_v62, %v512_v62 }
 0x24a   :  { %v535_v1 = vrot.slane %v534_v63, 7  ;;  %v533_v2 = vunpack.c.l.b16 %v514_v0 }
 0x24c   :  { %v537_v3 = vsel %vm536_vm10, %v535_v1, %v533_v2 }
 0x24d   :  { %v538_v4 = vpack.c.b16 %v537_v3, %v537_v3 }
 0x24f   :  { %747 = vmatmul.mubr.msk.bf16.vlgmr.msra.gmra.mxu0 %vm92_vm4, %v538_v4 }
 0x30f   :  { %v600_v6 = vpop.f32.mrf.mxu0 }
 0x310   :  { %v601_v7 = vadd.f32 %v661_v5, %v600_v6 }
 0x311   :  { %v748_v8 = vpop.f32.mrf.mxu0 }
 0x312   :  { %607 = vst.msk [vmem:[#allocation2] sm:$0x3] %vm606_vm11, %v601_v7 }
 0x313   :  { %v603_v10 = vpop.f32.mrf.mxu0 }
 0x314   :  { %783 = shalt.err (!%p780_p4)
}
 0x315   :  { %617 = dma.vmem_to_hbm [thread:$0]  %s615_s19, 32, %s948_s7, [#allocation3]   ;;  %v749_v11 = vpop.f32.mrf.mxu0 }
 0x316   :  { %792 = dma.done.wait [#allocation3], 32  }
 0x317   :  { %793 = vsyncadd [#allocation3], 4294967264 }
 0x318   :  { %621 = vsyncpa [#allocation3], 1 }

</bundles_post_ra>
